<compile_context>
chip_gen: v5e
topology: v5e:2x2
jax: 0.10.0
libtpu: 0.0.40
codegen_flags: <defaults>
</compile_context>

<pallas_src>
import functools

import jax
import jax.numpy as jnp
from jax import lax
from jax.experimental import pallas as pl
from jax.experimental.pallas import tpu as pltpu


def _round_up(x: int, m: int) -> int:
    return (x + m - 1) // m * m


def _label_smoothing_kernel(x_ref, tgt_ref, out_ref, *,
                            smooth_v: float, confidence: float,
                            classes: int, tile_n: int):
    i = pl.program_id(0)
    row0 = pl.multiple_of(i * tile_n, 8)

    x = x_ref[...].astype(jnp.float32)                    # (tile_n, C)
    tgt = tgt_ref[pl.ds(row0, tile_n), :]                 # (tile_n, 1) int32

    # logsumexp along the class (lane) axis; logp is never materialized.
    m = jnp.max(x, axis=-1, keepdims=True)                # (tile_n, 1)
    lse = m + jnp.log(jnp.sum(jnp.exp(x - m), axis=-1, keepdims=True))

    sum_x = jnp.sum(x, axis=-1, keepdims=True)            # (tile_n, 1)

    # one-hot selection of the target logit (scatter_ equivalent)
    col = lax.broadcasted_iota(jnp.int32, x.shape, 1)
    x_t = jnp.sum(jnp.where(col == tgt, x, 0.0), axis=-1, keepdims=True)

    sum_logp = sum_x - float(classes) * lse               # sum_c logp[c]
    logp_t = x_t - lse                                    # logp[target]

    out_ref[...] = (-smooth_v * sum_logp
                    - (confidence - smooth_v) * logp_t)   # (tile_n, 1)


def label_smoothing_loss(logits: jax.Array, targets: jax.Array,
                         *, classes: int, smoothing: float = 0.0,
                         tile_n: int | None = None) -> jax.Array:
    """logits: (N, C) float; targets: (N,) int class indices. Returns f32 scalar."""
    n, c = logits.shape
    assert c == classes
    confidence = 1.0 - smoothing
    smooth_v = smoothing / (classes - 1) if classes > 1 else 0.0

    # --- tile sizing: biggest row tile that keeps the double-buffered logits
    # stream comfortably inside scoped VMEM (sized for v7x's 64 MiB too). ---
    if tile_n is None:
        per_buf_budget = 4 * 1024 * 1024                  # bytes per logits buffer
        tile_n = per_buf_budget // (c * 4)
        tile_n = max(8, min(1024, tile_n))
    tile_n = max(8, (int(tile_n) // 8) * 8)               # sublane-aligned
    tile_n = min(tile_n, _round_up(n, 8))                 # don't over-pad tiny batches

    n_pad = _round_up(n, tile_n)
    if n_pad != n:
        logits = jnp.pad(logits, ((0, n_pad - n), (0, 0)))
        targets = jnp.pad(targets, ((0, n_pad - n),))
    tgt2d = targets.reshape(n_pad, 1).astype(jnp.int32)

    # --- VMEM budget: logits double buffer + resident targets + output tiles
    # + in-kernel f32 temporaries, with headroom. ---
    in_buf = tile_n * c * 4
    tgt_buf = _round_up(n_pad, 8) * 128 * 4               # lane-padded resident targets
    out_buf = tile_n * 128 * 4
    est = 2 * in_buf + 2 * tgt_buf + 2 * out_buf + 4 * in_buf + (1 << 20)
    vmem_limit = int(min(64 << 20, max(32 << 20, est)))

    kernel = functools.partial(
        _label_smoothing_kernel,
        smooth_v=float(smooth_v), confidence=float(confidence),
        classes=classes, tile_n=tile_n)

    row_losses = pl.pallas_call(
        kernel,
        out_shape=jax.ShapeDtypeStruct((n_pad, 1), jnp.float32),
        grid_spec=pltpu.PrefetchScalarGridSpec(
            num_scalar_prefetch=0,
            grid=(n_pad // tile_n,),
            in_specs=[
                pl.BlockSpec((tile_n, c), lambda i: (i, 0)),   # streamed logits tile
                pl.BlockSpec((n_pad, 1), lambda i: (0, 0)),    # targets, loaded once
            ],
            out_specs=pl.BlockSpec((tile_n, 1), lambda i: (i, 0)),
        ),
        compiler_params=pltpu.CompilerParams(
            dimension_semantics=("parallel",),                 # row axis is independent
            vmem_limit_bytes=vmem_limit),
    )(logits, tgt2d)

    # Final mean in the wrapper (drops padded rows); numerically safer than a
    # serial in-kernel (1,1) accumulator.
    return jnp.sum(row_losses[:n, 0]) / float(n)


def _reference(logits, targets, classes, smoothing):
    confidence = 1.0 - smoothing
    logp = jax.nn.log_softmax(logits.astype(jnp.float32), axis=-1)
    smooth_v = smoothing / (classes - 1) if classes > 1 else 0.0
    true_dist = jnp.full_like(logp, smooth_v)
    true_dist = true_dist.at[jnp.arange(logits.shape[0]), targets].set(confidence)
    return jnp.mean(jnp.sum(-true_dist * logp, axis=-1))


if __name__ == "__main__":
    key = jax.random.PRNGKey(0)

    # Case 1: aligned batch.
    N1, C1, sm1 = 16, 32, 0.1
    k1, k2, key = (*jax.random.split(key, 2), key)
    logits1 = jax.random.normal(k1, (N1, C1), dtype=jnp.float32)
    targets1 = jax.random.randint(k2, (N1,), 0, C1, dtype=jnp.int32)
    loss1 = jax.block_until_ready(
        label_smoothing_loss(logits1, targets1, classes=C1, smoothing=sm1))
    ref1 = _reference(logits1, targets1, C1, sm1)
    assert jnp.allclose(loss1, ref1, atol=1e-5, rtol=1e-4), (loss1, ref1)

    # Case 2: ragged batch (exercises padding + remainder masking).
    N2, C2, sm2 = 13, 40, 0.2
    k3, k4 = jax.random.split(jax.random.PRNGKey(1))
    logits2 = jax.random.normal(k3, (N2, C2), dtype=jnp.float32)
    targets2 = jax.random.randint(k4, (N2,), 0, C2, dtype=jnp.int32)
    loss2 = jax.block_until_ready(
        label_smoothing_loss(logits2, targets2, classes=C2, smoothing=sm2))
    ref2 = _reference(logits2, targets2, C2, sm2)
    assert jnp.allclose(loss2, ref2, atol=1e-5, rtol=1e-4), (loss2, ref2)

    print("KERNEL_OK")
</pallas_src>

<mosaic_0001>
module attributes {stable_mosaic.version = 11 : i64} {
  func.func @_label_smoothing_kernel(%arg0: i32, %arg1: memref<16x32xf32, #tpu.memory_space<vmem>>, %arg2: memref<16x1xi32, #tpu.memory_space<vmem>>, %arg3: memref<16x1xf32, #tpu.memory_space<vmem>>) attributes {dimension_semantics = [#tpu.dimension_semantics<parallel>], iteration_bounds = array<i64: 1>, scalar_prefetch = 0 : i64, scratch_operands = 0 : i64, tpu.core_type = #tpu.core_type<tc>, window_params = [{transform_indices = @transform_0, window_bounds = array<i64: 16, 32>}, {pipeline_mode = #tpu.pipeline_mode<synchronous>, transform_indices = @transform_1, window_bounds = array<i64: 16, 1>}, {transform_indices = @transform_2, window_bounds = array<i64: 16, 1>}]} {
    %c16_i32 = arith.constant 16 : i32
    %0 = arith.muli %arg0, %c16_i32 : i32
    %1 = tpu.assume_multiple %0, 8 : i32
    %c0 = arith.constant 0 : index
    %c0_0 = arith.constant 0 : index
    %2 = vector.load %arg1[%c0, %c0_0] : memref<16x32xf32, #tpu.memory_space<vmem>>, vector<16x32xf32>
    %3 = arith.index_cast %1 : i32 to index
    %c0_1 = arith.constant 0 : index
    %4 = vector.load %arg2[%3, %c0_1] : memref<16x1xi32, #tpu.memory_space<vmem>>, vector<16x1xi32>
    %cst = arith.constant dense<0xFF800000> : vector<16xf32>
    %5 = vector.multi_reduction <maximumf>, %2, %cst [1] : vector<16x32xf32> to vector<16xf32>
    %6 = vector.shape_cast %5 : vector<16xf32> to vector<16x1xf32>
    %7 = vector.broadcast %6 : vector<16x1xf32> to vector<16x32xf32>
    %8 = arith.subf %2, %7 : vector<16x32xf32>
    %9 = math.exp %8 : vector<16x32xf32>
    %cst_2 = arith.constant dense<0.000000e+00> : vector<16xf32>
    %10 = vector.multi_reduction <add>, %9, %cst_2 [1] : vector<16x32xf32> to vector<16xf32>
    %11 = vector.shape_cast %10 : vector<16xf32> to vector<16x1xf32>
    %12 = math.log %11 : vector<16x1xf32>
    %13 = arith.addf %6, %12 : vector<16x1xf32>
    %cst_3 = arith.constant dense<0.000000e+00> : vector<16xf32>
    %14 = vector.multi_reduction <add>, %2, %cst_3 [1] : vector<16x32xf32> to vector<16xf32>
    %15 = vector.shape_cast %14 : vector<16xf32> to vector<16x1xf32>
    %16 = tpu.iota {dimensions = array<i32: 1>} : vector<16x32xi32>
    %17 = vector.broadcast %4 : vector<16x1xi32> to vector<16x32xi32>
    %18 = arith.cmpi eq, %16, %17 : vector<16x32xi32>
    %cst_4 = arith.constant 0.000000e+00 : f32
    %19 = vector.broadcast %cst_4 : f32 to vector<16x32xf32>
    %20 = arith.select %18, %2, %19 : vector<16x32xi1>, vector<16x32xf32>
    %cst_5 = arith.constant dense<0.000000e+00> : vector<16xf32>
    %21 = vector.multi_reduction <add>, %20, %cst_5 [1] : vector<16x32xf32> to vector<16xf32>
    %22 = vector.shape_cast %21 : vector<16xf32> to vector<16x1xf32>
    %cst_6 = arith.constant 3.200000e+01 : f32
    %23 = vector.broadcast %cst_6 : f32 to vector<16x1xf32>
    %24 = arith.mulf %23, %13 : vector<16x1xf32>
    %25 = arith.subf %15, %24 : vector<16x1xf32>
    %26 = arith.subf %22, %13 : vector<16x1xf32>
    %cst_7 = arith.constant -0.0032258064 : f32
    %27 = vector.broadcast %cst_7 : f32 to vector<16x1xf32>
    %28 = arith.mulf %27, %25 : vector<16x1xf32>
    %cst_8 = arith.constant 0.896774172 : f32
    %29 = vector.broadcast %cst_8 : f32 to vector<16x1xf32>
    %30 = arith.mulf %29, %26 : vector<16x1xf32>
    %31 = arith.subf %28, %30 : vector<16x1xf32>
    %c0_9 = arith.constant 0 : index
    %c0_10 = arith.constant 0 : index
    %32 = vector.load %arg3[%c0_9, %c0_10] : memref<16x1xf32, #tpu.memory_space<vmem>>, vector<16x1xf32>
    tpu.vector_store %arg3[%c0_9, %c0_10], %31 {strides = array<i32>} : memref<16x1xf32, #tpu.memory_space<vmem>>, vector<16x1xf32>,
    return
  }
  func.func @transform_0(%arg0: i32) -> (i32, i32) {
    %c0_i32 = arith.constant 0 : i32
    %c0_i32_0 = arith.constant 0 : i32
    return %arg0, %c0_i32 : i32, i32
  }
  func.func @transform_1(%arg0: i32) -> (i32, i32) {
    %c0_i32 = arith.constant 0 : i32
    %c0_i32_0 = arith.constant 0 : i32
    %c0_i32_1 = arith.constant 0 : i32
    return %c0_i32, %c0_i32_0 : i32, i32
  }
  func.func @transform_2(%arg0: i32) -> (i32, i32) {
    %c0_i32 = arith.constant 0 : i32
    %c0_i32_0 = arith.constant 0 : i32
    return %arg0, %c0_i32 : i32, i32
  }
}

</mosaic_0001>

<bundles_post_ra>
// kernel: tpu_custom_call.1
= control target key start
LH: loop header
LB: loop body
LE: loop exit
PB: predicated region body
PF: predicated region fallthrough
CT: control target
= control target key end

     0   :  { %vm17_vm0 = vcmask 261120   ;;  %v96_v1 = vmov 0   ;;  %v48_v10 = vlaneseq  ;;  %vm78_vm3 = vcmask 7168   ;;  %s138_s0 = inlined_call_operand.vmem [shape: f32[16,32], index: 0, kind: input, shape index: {}]   ;;  %s139_s1 = inlined_call_operand.vmem [shape: s32[16,1], index: 1, kind: input, shape index: {}]   ;;  %s140_s2 = inlined_call_operand.vmem [shape: f32[16,1], index: 2, kind: output, shape index: {}]  }
   0x1   :  { %v12_v0 = vld [vmem:[%s138_s0] sm:$0xff]  ;;  %86 = vset.pattern.permute.xlu1 %v96_v1  ;;  %87 = vset.pattern.permute.xlu0 %v96_v1  ;;  %v13_v4 = vld [vmem:[%s138_s0 + $0x8] sm:$0xff] }
   0x2   :  { %v15_v2 = vld [vmem:[%s139_s1] sm:$0xff]  ;;  %v18_v3 = vsel %vm17_vm0, %v12_v0, -inf  ;;  %v16_v5 = vld [vmem:[%s139_s1 + $0x8] sm:$0xff]  ;;  %v21_v6 = vsel %vm17_vm0, %v13_v4, -inf  ;;  %v42_v7 = vsel %vm17_vm0, %v12_v0, 0.0  ;;  %v45_v8 = vsel %vm17_vm0, %v13_v4, 0.0 }
   0x3   :  { %51 = vperm.xlu1 %86, %v15_v2   ;;  %19 = vmax.xlane.f32.xlu0 %v18_v3  ;;  %v49_v14 = vand.u32 127, %v48_v10 }
   0xb   :  { %54 = vperm.xlu1 %86, %v16_v5   ;;  %22 = vmax.xlane.f32.xlu0 %v21_v6 }
  0x13   :  { %43 = vadd.xlane.f32.xlu0 %v42_v7 }
  0x35   :  { %46 = vadd.xlane.f32.xlu1 %v45_v8 }
  0x75   :  { %v52_v9 = vpop.permute.xlu1 %51 }
  0x76   :  { %v20_v11 = vpop.xlane.xlu0 %19  ;;  %vm56_vm2 = vcmp.eq.s32.totalorder %v49_v14, %v52_v9 }
  0x77   :  { %v24_v12 = vsub.f32 %v12_v0, %v20_v11  ;;  %v58_v25 = vsel %vm56_vm2, %v12_v0, 0.0 }
  0x78   :  { %v60_v26 = vsel %vm17_vm0, %v58_v25, 0.0 }
  0x79   :  { %v26_v13 = vmul.f32 1.442695, %v24_v12 }
  0x7b   :  { %88 = vpow2.f32 %v26_v13 }
  0x7d   :  { %v55_v15 = vpop.permute.xlu1 %54 }
  0x7e   :  { %vm57_vm1 = vcmp.eq.s32.totalorder %v49_v14, %v55_v15  ;;  %v23_v16 = vpop.xlane.xlu0 %22 }
  0x7f   :  { %v59_v17 = vsel %vm57_vm1, %v13_v4, 0.0  ;;  %v25_v18 = vsub.f32 %v13_v4, %v23_v16 }
  0x80   :  { %v63_v19 = vsel %vm17_vm0, %v59_v17, 0.0 }
  0x81   :  { %64 = vadd.xlane.f32.xlu0 %v63_v19  ;;  %v89_v20 = vpop.eup %88  ;;  %v28_v21 = vmul.f32 1.442695, %v25_v18 }
  0x82   :  { %v30_v22 = vsel %vm17_vm0, %v89_v20, 0.0 }
  0x83   :  { %90 = vpow2.f32 %v28_v21  ;;  %31 = vadd.xlane.f32.xlu2 %v30_v22 }
  0x86   :  { %v44_v31 = vpop.xlane.xlu0 %43 }
  0x89   :  { %v91_v23 = vpop.eup %90 }
  0x8a   :  { %v33_v24 = vsel %vm17_vm0, %v91_v23, 0.0 }
  0x8b   :  { %34 = vadd.xlane.f32.xlu2 %v33_v24 }
  0x93   :  { %61 = vadd.xlane.f32.xlu2 %v60_v26 }
  0xa8   :  { %v47_v43 = vpop.xlane.xlu1 %46 }
  0xf4   :  { %v65_v41 = vpop.xlane.xlu0 %64 }
  0xf6   :  { %v32_v27 = vpop.xlane.xlu2 %31 }
  0xf7   :  { %92 = vlog2.f32 %v32_v27 }
  0xfd   :  { %v93_v28 = vpop.eup %92 }
  0xfe   :  { %v37_v29 = vmul.f32 0.6931472, %v93_v28  ;;  %v35_v30 = vpop.xlane.xlu2 %34 }
  0xff   :  { %94 = vlog2.f32 %v35_v30 }
 0x100   :  { %v40_v32 = vadd.f32 %v37_v29, %v20_v11 }
 0x102   :  { %v66_v33 = vmul.f32 32.0, %v40_v32 }
 0x104   :  { %v68_v35 = vsub.f32 %v44_v31, %v66_v33 }
 0x105   :  { %v95_v34 = vpop.eup %94 }
 0x106   :  { %v39_v36 = vmul.f32 0.6931472, %v95_v34  ;;  %v62_v37 = vpop.xlane.xlu2 %61  ;;  %v72_v40 = vmul.f32 -0.0032258064, %v68_v35 }
 0x107   :  { %v70_v38 = vsub.f32 %v62_v37, %v40_v32 }
 0x108   :  { %v41_v39 = vadd.f32 %v39_v36, %v23_v16 }
 0x109   :  { %v74_v42 = vmul.f32 0.8967742, %v70_v38 }
 0x10a   :  { %v71_v44 = vsub.f32 %v65_v41, %v41_v39  ;;  %v67_v45 = vmul.f32 32.0, %v41_v39 }
 0x10b   :  { %v76_v46 = vsub.f32 %v72_v40, %v74_v42 }
 0x10c   :  { %v69_v47 = vsub.f32 %v47_v43, %v67_v45  ;;  %v75_v48 = vmul.f32 0.8967742, %v71_v44 }
 0x10d   :  { %79 = vst.msk [vmem:[%s140_s2] sm:$0xff] %vm78_vm3, %v76_v46 }
 0x10e   :  { %v73_v49 = vmul.f32 -0.0032258064, %v69_v47 }
 0x110   :  { %v77_v50 = vsub.f32 %v73_v49, %v75_v48 }
 0x112   :  { %80 = vst.msk [vmem:[%s140_s2 + $0x8] sm:$0xff] %vm78_vm3, %v77_v50 }

</bundles_post_ra>
